<compile_context>
chip_gen: v7x
topology: tpu7x:2x2x1
jax: 0.10.0
libtpu: 0.0.40
codegen_flags: <defaults>
</compile_context>

<pallas_src>
import functools

import jax
import jax.numpy as jnp
from jax.experimental import pallas as pl
from jax.experimental.pallas import tpu as pltpu


def _round_up(n, m):
  return ((n + m - 1) // m) * m


def _temporal_attention_kernel(x_ref, wT_ref, b_ref, v_ref, out_ref,
                               scores_ref):
  """One batch block.

  x_ref:      (T, H, BB)  input, batch in lanes
  wT_ref:     (H, H)      W^T (so h = W^T @ x == (x @ W)^T)
  b_ref:      (H, 1)      bias, broadcast over lanes
  v_ref:      (H, 1)      scoring vector
  out_ref:    (T, BB)     attention weights (softmax over T)
  scores_ref: (T, BB)     f32 VMEM scratch for the raw scores
  """
  f32 = jnp.float32
  T = x_ref.shape[0]

  # Hoist the (tiny) parameters out of the timestep loop once per grid step.
  wT = wT_ref[...]                                   # (H, H)
  b = b_ref[...]                                     # (H, 1)
  v = v_ref[...]                                     # (H, 1)

  # scores[t, b] = V . tanh(W^T x[t, :, b] + b)
  for t in range(T):                                 # static unroll, T small
    xt = x_ref[t]                                    # (H, BB)  lane-dense
    ht = jnp.tanh(jnp.dot(wT, xt, preferred_element_type=f32) + b)   # (H, BB)
    scores_ref[pl.ds(t, 1), :] = jnp.sum(v * ht, axis=0, keepdims=True)

  # Exact softmax over the sequence (sublane) axis.
  s = scores_ref[...]                                # (T, BB)
  s = s - jnp.max(s, axis=0, keepdims=True)
  e = jnp.exp(s)
  out_ref[...] = e / jnp.sum(e, axis=0, keepdims=True)


def temporal_attention_forward(x, W, b, V):
  """x: (B, T, H) f32  ->  attention weights (B, T, 1), softmax over T."""
  B, T, H = x.shape
  f32 = jnp.float32

  # Batch block: as many lanes as possible (<=128), clamped to the padded
  # batch.  For B > 128 this yields a multi-block "parallel" grid (v7x TCs).
  BB = min(128, _round_up(B, 8))
  Bp = _round_up(B, BB)

  # Wrapper-side layout plumbing: batch-last (lane) layout, zero-padded batch.
  xt = jnp.transpose(x.astype(f32), (1, 2, 0))       # (T, H, B)
  xt = jnp.pad(xt, ((0, 0), (0, 0), (0, Bp - B)))    # (T, H, Bp)
  wT = jnp.transpose(W).astype(f32)                  # (H, H)
  b2 = b.reshape(H, 1).astype(f32)
  v2 = V.reshape(H, 1).astype(f32)

  out = pl.pallas_call(
      _temporal_attention_kernel,
      out_shape=jax.ShapeDtypeStruct((T, Bp), f32),
      grid=(Bp // BB,),
      in_specs=[
          pl.BlockSpec((T, H, BB), lambda i: (0, 0, i)),   # x, batch-blocked
          pl.BlockSpec((H, H), lambda i: (0, 0)),          # W^T, replicated
          pl.BlockSpec((H, 1), lambda i: (0, 0)),          # b
          pl.BlockSpec((H, 1), lambda i: (0, 0)),          # V
      ],
      out_specs=pl.BlockSpec((T, BB), lambda i: (0, i)),
      scratch_shapes=[pltpu.VMEM((T, BB), f32)],
      compiler_params=pltpu.CompilerParams(
          dimension_semantics=("parallel",),
          vmem_limit_bytes=32 * 1024 * 1024),
  )(xt, wT, b2, v2)

  # Back to torch layout: (B, T) -> unsqueeze(-1); drop batch padding.
  return jnp.transpose(out, (1, 0))[:B][..., None]   # (B, T, 1)


def temporal_attention_reference(x, W, b, V):
  """Pure-JAX reference of the PyTorch forward (f32, highest precision)."""
  h = jnp.tanh(jnp.einsum("bth,hk->btk", x, W, precision="highest") + b)
  scores = jnp.einsum("btk,k->bt", h, V, precision="highest")
  return jax.nn.softmax(scores, axis=1)[..., None]


if __name__ == "__main__":
  # Small shapes implied by the module: x is (batch, seq_len, hidden_dim).
  B, T, H = 2, 8, 32

  key = jax.random.PRNGKey(0)
  kx, kw, kb, kv = jax.random.split(key, 4)
  x = jax.random.normal(kx, (B, T, H), jnp.float32)
  W = jax.random.normal(kw, (H, H), jnp.float32)      # torch.randn init
  b = jax.random.normal(kb, (H,), jnp.float32)
  V = jax.random.normal(kv, (H,), jnp.float32)

  fwd = jax.jit(temporal_attention_forward)
  attn = fwd(x, W, b, V)
  jax.block_until_ready(attn)

  assert attn.shape == (B, T, 1), attn.shape
  assert bool(jnp.all(jnp.isfinite(attn)))
  # Attention weights must sum to 1 over the sequence dimension.
  assert bool(jnp.allclose(jnp.sum(attn[..., 0], axis=1), 1.0, atol=1e-3))
  # Match the PyTorch-equivalent reference (loose tol covers MXU f32 paths).
  ref = temporal_attention_reference(x, W, b, V)
  assert bool(jnp.allclose(attn, ref, atol=2e-2)), float(
      jnp.max(jnp.abs(attn - ref)))

  print("KERNEL_OK")
</pallas_src>

<mosaic_0001>
module attributes {stable_mosaic.version = 11 : i64} {
  func.func @_temporal_attention_kernel(%arg0: i32, %arg1: memref<8x32x8xf32, #tpu.memory_space<vmem>>, %arg2: memref<32x32xf32, #tpu.memory_space<vmem>>, %arg3: memref<32x1xf32, #tpu.memory_space<vmem>>, %arg4: memref<32x1xf32, #tpu.memory_space<vmem>>, %arg5: memref<8x8xf32, #tpu.memory_space<vmem>>, %arg6: memref<8x8xf32, #tpu.memory_space<vmem>>) attributes {dimension_semantics = [#tpu.dimension_semantics<parallel>], iteration_bounds = array<i64: 1>, scalar_prefetch = 0 : i64, scratch_operands = 1 : i64, tpu.core_type = #tpu.core_type<tc>, window_params = [{transform_indices = @transform_0, window_bounds = array<i64: 8, 32, 8>}, {pipeline_mode = #tpu.pipeline_mode<synchronous>, transform_indices = @transform_1, window_bounds = array<i64: 32, 32>}, {pipeline_mode = #tpu.pipeline_mode<synchronous>, transform_indices = @transform_2, window_bounds = array<i64: 32, 1>}, {pipeline_mode = #tpu.pipeline_mode<synchronous>, transform_indices = @transform_3, window_bounds = array<i64: 32, 1>}, {transform_indices = @transform_4, window_bounds = array<i64: 8, 8>}]} {
    %c0 = arith.constant 0 : index
    %c0_0 = arith.constant 0 : index
    %0 = vector.load %arg2[%c0, %c0_0] : memref<32x32xf32, #tpu.memory_space<vmem>>, vector<32x32xf32>
    %c0_1 = arith.constant 0 : index
    %c0_2 = arith.constant 0 : index
    %1 = vector.load %arg3[%c0_1, %c0_2] : memref<32x1xf32, #tpu.memory_space<vmem>>, vector<32x1xf32>
    %c0_3 = arith.constant 0 : index
    %c0_4 = arith.constant 0 : index
    %2 = vector.load %arg4[%c0_3, %c0_4] : memref<32x1xf32, #tpu.memory_space<vmem>>, vector<32x1xf32>
    %c0_5 = arith.constant 0 : index
    %c0_6 = arith.constant 0 : index
    %c0_7 = arith.constant 0 : index
    %3 = vector.load %arg1[%c0_5, %c0_6, %c0_7] : memref<8x32x8xf32, #tpu.memory_space<vmem>>, vector<1x32x8xf32>
    %4 = vector.shape_cast %3 : vector<1x32x8xf32> to vector<32x8xf32>
    %cst = arith.constant dense<0.000000e+00> : vector<32x8xf32>
    %5 = tpu.matmul %0, %4, %cst {dimension_numbers = #tpu.dot_dimension_numbers<[1], [0], [0], [1], [0, 0, 1, 1], [], []>} : vector<32x32xf32>, vector<32x8xf32>, vector<32x8xf32> -> vector<32x8xf32>
    %6 = vector.broadcast %1 : vector<32x1xf32> to vector<32x8xf32>
    %7 = arith.addf %5, %6 : vector<32x8xf32>
    %8 = math.tanh %7 : vector<32x8xf32>
    %9 = vector.broadcast %2 : vector<32x1xf32> to vector<32x8xf32>
    %10 = arith.mulf %9, %8 : vector<32x8xf32>
    %cst_8 = arith.constant dense<0.000000e+00> : vector<8xf32>
    %11 = vector.multi_reduction <add>, %10, %cst_8 [0] : vector<32x8xf32> to vector<8xf32>
    %12 = vector.shape_cast %11 : vector<8xf32> to vector<1x8xf32>
    %c0_9 = arith.constant 0 : index
    %c0_10 = arith.constant 0 : index
    %13 = vector.load %arg6[%c0_9, %c0_10] : memref<8x8xf32, #tpu.memory_space<vmem>>, vector<1x8xf32>
    tpu.vector_store %arg6[%c0_9, %c0_10], %12 {strides = array<i32>} : memref<8x8xf32, #tpu.memory_space<vmem>>, vector<1x8xf32>,
    %c1 = arith.constant 1 : index
    %c0_11 = arith.constant 0 : index
    %c0_12 = arith.constant 0 : index
    %14 = vector.load %arg1[%c1, %c0_11, %c0_12] : memref<8x32x8xf32, #tpu.memory_space<vmem>>, vector<1x32x8xf32>
    %15 = vector.shape_cast %14 : vector<1x32x8xf32> to vector<32x8xf32>
    %cst_13 = arith.constant dense<0.000000e+00> : vector<32x8xf32>
    %16 = tpu.matmul %0, %15, %cst_13 {dimension_numbers = #tpu.dot_dimension_numbers<[1], [0], [0], [1], [0, 0, 1, 1], [], []>} : vector<32x32xf32>, vector<32x8xf32>, vector<32x8xf32> -> vector<32x8xf32>
    %17 = vector.broadcast %1 : vector<32x1xf32> to vector<32x8xf32>
    %18 = arith.addf %16, %17 : vector<32x8xf32>
    %19 = math.tanh %18 : vector<32x8xf32>
    %20 = vector.broadcast %2 : vector<32x1xf32> to vector<32x8xf32>
    %21 = arith.mulf %20, %19 : vector<32x8xf32>
    %cst_14 = arith.constant dense<0.000000e+00> : vector<8xf32>
    %22 = vector.multi_reduction <add>, %21, %cst_14 [0] : vector<32x8xf32> to vector<8xf32>
    %23 = vector.shape_cast %22 : vector<8xf32> to vector<1x8xf32>
    %c1_15 = arith.constant 1 : index
    %c0_16 = arith.constant 0 : index
    %24 = vector.load %arg6[%c1_15, %c0_16] : memref<8x8xf32, #tpu.memory_space<vmem>>, vector<1x8xf32>
    tpu.vector_store %arg6[%c1_15, %c0_16], %23 {strides = array<i32>} : memref<8x8xf32, #tpu.memory_space<vmem>>, vector<1x8xf32>,
    %c2 = arith.constant 2 : index
    %c0_17 = arith.constant 0 : index
    %c0_18 = arith.constant 0 : index
    %25 = vector.load %arg1[%c2, %c0_17, %c0_18] : memref<8x32x8xf32, #tpu.memory_space<vmem>>, vector<1x32x8xf32>
    %26 = vector.shape_cast %25 : vector<1x32x8xf32> to vector<32x8xf32>
    %cst_19 = arith.constant dense<0.000000e+00> : vector<32x8xf32>
    %27 = tpu.matmul %0, %26, %cst_19 {dimension_numbers = #tpu.dot_dimension_numbers<[1], [0], [0], [1], [0, 0, 1, 1], [], []>} : vector<32x32xf32>, vector<32x8xf32>, vector<32x8xf32> -> vector<32x8xf32>
    %28 = vector.broadcast %1 : vector<32x1xf32> to vector<32x8xf32>
    %29 = arith.addf %27, %28 : vector<32x8xf32>
    %30 = math.tanh %29 : vector<32x8xf32>
    %31 = vector.broadcast %2 : vector<32x1xf32> to vector<32x8xf32>
    %32 = arith.mulf %31, %30 : vector<32x8xf32>
    %cst_20 = arith.constant dense<0.000000e+00> : vector<8xf32>
    %33 = vector.multi_reduction <add>, %32, %cst_20 [0] : vector<32x8xf32> to vector<8xf32>
    %34 = vector.shape_cast %33 : vector<8xf32> to vector<1x8xf32>
    %c2_21 = arith.constant 2 : index
    %c0_22 = arith.constant 0 : index
    %35 = vector.load %arg6[%c2_21, %c0_22] : memref<8x8xf32, #tpu.memory_space<vmem>>, vector<1x8xf32>
    tpu.vector_store %arg6[%c2_21, %c0_22], %34 {strides = array<i32>} : memref<8x8xf32, #tpu.memory_space<vmem>>, vector<1x8xf32>,
    %c3 = arith.constant 3 : index
    %c0_23 = arith.constant 0 : index
    %c0_24 = arith.constant 0 : index
    %36 = vector.load %arg1[%c3, %c0_23, %c0_24] : memref<8x32x8xf32, #tpu.memory_space<vmem>>, vector<1x32x8xf32>
    %37 = vector.shape_cast %36 : vector<1x32x8xf32> to vector<32x8xf32>
    %cst_25 = arith.constant dense<0.000000e+00> : vector<32x8xf32>
    %38 = tpu.matmul %0, %37, %cst_25 {dimension_numbers = #tpu.dot_dimension_numbers<[1], [0], [0], [1], [0, 0, 1, 1], [], []>} : vector<32x32xf32>, vector<32x8xf32>, vector<32x8xf32> -> vector<32x8xf32>
    %39 = vector.broadcast %1 : vector<32x1xf32> to vector<32x8xf32>
    %40 = arith.addf %38, %39 : vector<32x8xf32>
    %41 = math.tanh %40 : vector<32x8xf32>
    %42 = vector.broadcast %2 : vector<32x1xf32> to vector<32x8xf32>
    %43 = arith.mulf %42, %41 : vector<32x8xf32>
    %cst_26 = arith.constant dense<0.000000e+00> : vector<8xf32>
    %44 = vector.multi_reduction <add>, %43, %cst_26 [0] : vector<32x8xf32> to vector<8xf32>
    %45 = vector.shape_cast %44 : vector<8xf32> to vector<1x8xf32>
    %c3_27 = arith.constant 3 : index
    %c0_28 = arith.constant 0 : index
    %46 = vector.load %arg6[%c3_27, %c0_28] : memref<8x8xf32, #tpu.memory_space<vmem>>, vector<1x8xf32>
    tpu.vector_store %arg6[%c3_27, %c0_28], %45 {strides = array<i32>} : memref<8x8xf32, #tpu.memory_space<vmem>>, vector<1x8xf32>,
    %c4 = arith.constant 4 : index
    %c0_29 = arith.constant 0 : index
    %c0_30 = arith.constant 0 : index
    %47 = vector.load %arg1[%c4, %c0_29, %c0_30] : memref<8x32x8xf32, #tpu.memory_space<vmem>>, vector<1x32x8xf32>
    %48 = vector.shape_cast %47 : vector<1x32x8xf32> to vector<32x8xf32>
    %cst_31 = arith.constant dense<0.000000e+00> : vector<32x8xf32>
    %49 = tpu.matmul %0, %48, %cst_31 {dimension_numbers = #tpu.dot_dimension_numbers<[1], [0], [0], [1], [0, 0, 1, 1], [], []>} : vector<32x32xf32>, vector<32x8xf32>, vector<32x8xf32> -> vector<32x8xf32>
    %50 = vector.broadcast %1 : vector<32x1xf32> to vector<32x8xf32>
    %51 = arith.addf %49, %50 : vector<32x8xf32>
    %52 = math.tanh %51 : vector<32x8xf32>
    %53 = vector.broadcast %2 : vector<32x1xf32> to vector<32x8xf32>
    %54 = arith.mulf %53, %52 : vector<32x8xf32>
    %cst_32 = arith.constant dense<0.000000e+00> : vector<8xf32>
    %55 = vector.multi_reduction <add>, %54, %cst_32 [0] : vector<32x8xf32> to vector<8xf32>
    %56 = vector.shape_cast %55 : vector<8xf32> to vector<1x8xf32>
    %c4_33 = arith.constant 4 : index
    %c0_34 = arith.constant 0 : index
    %57 = vector.load %arg6[%c4_33, %c0_34] : memref<8x8xf32, #tpu.memory_space<vmem>>, vector<1x8xf32>
    tpu.vector_store %arg6[%c4_33, %c0_34], %56 {strides = array<i32>} : memref<8x8xf32, #tpu.memory_space<vmem>>, vector<1x8xf32>,
    %c5 = arith.constant 5 : index
    %c0_35 = arith.constant 0 : index
    %c0_36 = arith.constant 0 : index
    %58 = vector.load %arg1[%c5, %c0_35, %c0_36] : memref<8x32x8xf32, #tpu.memory_space<vmem>>, vector<1x32x8xf32>
    %59 = vector.shape_cast %58 : vector<1x32x8xf32> to vector<32x8xf32>
    %cst_37 = arith.constant dense<0.000000e+00> : vector<32x8xf32>
    %60 = tpu.matmul %0, %59, %cst_37 {dimension_numbers = #tpu.dot_dimension_numbers<[1], [0], [0], [1], [0, 0, 1, 1], [], []>} : vector<32x32xf32>, vector<32x8xf32>, vector<32x8xf32> -> vector<32x8xf32>
    %61 = vector.broadcast %1 : vector<32x1xf32> to vector<32x8xf32>
    %62 = arith.addf %60, %61 : vector<32x8xf32>
    %63 = math.tanh %62 : vector<32x8xf32>
    %64 = vector.broadcast %2 : vector<32x1xf32> to vector<32x8xf32>
    %65 = arith.mulf %64, %63 : vector<32x8xf32>
    %cst_38 = arith.constant dense<0.000000e+00> : vector<8xf32>
    %66 = vector.multi_reduction <add>, %65, %cst_38 [0] : vector<32x8xf32> to vector<8xf32>
    %67 = vector.shape_cast %66 : vector<8xf32> to vector<1x8xf32>
    %c5_39 = arith.constant 5 : index
    %c0_40 = arith.constant 0 : index
    %68 = vector.load %arg6[%c5_39, %c0_40] : memref<8x8xf32, #tpu.memory_space<vmem>>, vector<1x8xf32>
    tpu.vector_store %arg6[%c5_39, %c0_40], %67 {strides = array<i32>} : memref<8x8xf32, #tpu.memory_space<vmem>>, vector<1x8xf32>,
    %c6 = arith.constant 6 : index
    %c0_41 = arith.constant 0 : index
    %c0_42 = arith.constant 0 : index
    %69 = vector.load %arg1[%c6, %c0_41, %c0_42] : memref<8x32x8xf32, #tpu.memory_space<vmem>>, vector<1x32x8xf32>
    %70 = vector.shape_cast %69 : vector<1x32x8xf32> to vector<32x8xf32>
    %cst_43 = arith.constant dense<0.000000e+00> : vector<32x8xf32>
    %71 = tpu.matmul %0, %70, %cst_43 {dimension_numbers = #tpu.dot_dimension_numbers<[1], [0], [0], [1], [0, 0, 1, 1], [], []>} : vector<32x32xf32>, vector<32x8xf32>, vector<32x8xf32> -> vector<32x8xf32>
    %72 = vector.broadcast %1 : vector<32x1xf32> to vector<32x8xf32>
    %73 = arith.addf %71, %72 : vector<32x8xf32>
    %74 = math.tanh %73 : vector<32x8xf32>
    %75 = vector.broadcast %2 : vector<32x1xf32> to vector<32x8xf32>
    %76 = arith.mulf %75, %74 : vector<32x8xf32>
    %cst_44 = arith.constant dense<0.000000e+00> : vector<8xf32>
    %77 = vector.multi_reduction <add>, %76, %cst_44 [0] : vector<32x8xf32> to vector<8xf32>
    %78 = vector.shape_cast %77 : vector<8xf32> to vector<1x8xf32>
    %c6_45 = arith.constant 6 : index
    %c0_46 = arith.constant 0 : index
    %79 = vector.load %arg6[%c6_45, %c0_46] : memref<8x8xf32, #tpu.memory_space<vmem>>, vector<1x8xf32>
    tpu.vector_store %arg6[%c6_45, %c0_46], %78 {strides = array<i32>} : memref<8x8xf32, #tpu.memory_space<vmem>>, vector<1x8xf32>,
    %c7 = arith.constant 7 : index
    %c0_47 = arith.constant 0 : index
    %c0_48 = arith.constant 0 : index
    %80 = vector.load %arg1[%c7, %c0_47, %c0_48] : memref<8x32x8xf32, #tpu.memory_space<vmem>>, vector<1x32x8xf32>
    %81 = vector.shape_cast %80 : vector<1x32x8xf32> to vector<32x8xf32>
    %cst_49 = arith.constant dense<0.000000e+00> : vector<32x8xf32>
    %82 = tpu.matmul %0, %81, %cst_49 {dimension_numbers = #tpu.dot_dimension_numbers<[1], [0], [0], [1], [0, 0, 1, 1], [], []>} : vector<32x32xf32>, vector<32x8xf32>, vector<32x8xf32> -> vector<32x8xf32>
    %83 = vector.broadcast %1 : vector<32x1xf32> to vector<32x8xf32>
    %84 = arith.addf %82, %83 : vector<32x8xf32>
    %85 = math.tanh %84 : vector<32x8xf32>
    %86 = vector.broadcast %2 : vector<32x1xf32> to vector<32x8xf32>
    %87 = arith.mulf %86, %85 : vector<32x8xf32>
    %cst_50 = arith.constant dense<0.000000e+00> : vector<8xf32>
    %88 = vector.multi_reduction <add>, %87, %cst_50 [0] : vector<32x8xf32> to vector<8xf32>
    %89 = vector.shape_cast %88 : vector<8xf32> to vector<1x8xf32>
    %c7_51 = arith.constant 7 : index
    %c0_52 = arith.constant 0 : index
    %90 = vector.load %arg6[%c7_51, %c0_52] : memref<8x8xf32, #tpu.memory_space<vmem>>, vector<1x8xf32>
    tpu.vector_store %arg6[%c7_51, %c0_52], %89 {strides = array<i32>} : memref<8x8xf32, #tpu.memory_space<vmem>>, vector<1x8xf32>,
    %c0_53 = arith.constant 0 : index
    %c0_54 = arith.constant 0 : index
    %91 = vector.load %arg6[%c0_53, %c0_54] : memref<8x8xf32, #tpu.memory_space<vmem>>, vector<8x8xf32>
    %cst_55 = arith.constant dense<0xFF800000> : vector<8xf32>
    %92 = vector.multi_reduction <maximumf>, %91, %cst_55 [0] : vector<8x8xf32> to vector<8xf32>
    %93 = vector.shape_cast %92 : vector<8xf32> to vector<1x8xf32>
    %94 = vector.broadcast %93 : vector<1x8xf32> to vector<8x8xf32>
    %95 = arith.subf %91, %94 : vector<8x8xf32>
    %96 = math.exp %95 : vector<8x8xf32>
    %cst_56 = arith.constant dense<0.000000e+00> : vector<8xf32>
    %97 = vector.multi_reduction <add>, %96, %cst_56 [0] : vector<8x8xf32> to vector<8xf32>
    %98 = vector.shape_cast %97 : vector<8xf32> to vector<1x8xf32>
    %99 = vector.broadcast %98 : vector<1x8xf32> to vector<8x8xf32>
    %100 = arith.divf %96, %99 : vector<8x8xf32>
    %c0_57 = arith.constant 0 : index
    %c0_58 = arith.constant 0 : index
    %101 = vector.load %arg5[%c0_57, %c0_58] : memref<8x8xf32, #tpu.memory_space<vmem>>, vector<8x8xf32>
    tpu.vector_store %arg5[%c0_57, %c0_58], %100 {strides = array<i32>} : memref<8x8xf32, #tpu.memory_space<vmem>>, vector<8x8xf32>,
    return
  }
  func.func @transform_0(%arg0: i32) -> (i32, i32, i32) {
    %c0_i32 = arith.constant 0 : i32
    %c0_i32_0 = arith.constant 0 : i32
    %c0_i32_1 = arith.constant 0 : i32
    return %c0_i32, %c0_i32_0, %arg0 : i32, i32, i32
  }
  func.func @transform_1(%arg0: i32) -> (i32, i32) {
    %c0_i32 = arith.constant 0 : i32
    %c0_i32_0 = arith.constant 0 : i32
    %c0_i32_1 = arith.constant 0 : i32
    return %c0_i32, %c0_i32_0 : i32, i32
  }
  func.func @transform_2(%arg0: i32) -> (i32, i32) {
    %c0_i32 = arith.constant 0 : i32
    %c0_i32_0 = arith.constant 0 : i32
    %c0_i32_1 = arith.constant 0 : i32
    return %c0_i32, %c0_i32_0 : i32, i32
  }
  func.func @transform_3(%arg0: i32) -> (i32, i32) {
    %c0_i32 = arith.constant 0 : i32
    %c0_i32_0 = arith.constant 0 : i32
    %c0_i32_1 = arith.constant 0 : i32
    return %c0_i32, %c0_i32_0 : i32, i32
  }
  func.func @transform_4(%arg0: i32) -> (i32, i32) {
    %c0_i32 = arith.constant 0 : i32
    %c0_i32_0 = arith.constant 0 : i32
    return %c0_i32, %arg0 : i32, i32
  }
}

</mosaic_0001>

<bundles_post_ra>
// kernel: temporal_attention_forward.1
= control target key start
LH: loop header
LB: loop body
LE: loop exit
PB: predicated region body
PF: predicated region fallthrough
CT: control target
= control target key end

     0   :  { %vm53_vm0 = vcmask 261120   ;;  %v1375_v3 = vmov 0   ;;  %vm179_vm1 = vcmask 64512   ;;  %vm193_vm2 = vcmask 57344   ;;  %s1743_s0 = inlined_call_operand.vmem [shape: f32[8,32,8], index: 0, kind: input, shape index: {}]   ;;  %s1744_s1 = inlined_call_operand.vmem [shape: f32[32,32], index: 1, kind: input, shape index: {}]   ;;  %s1745_s2 = inlined_call_operand.vmem [shape: f32[32,1], index: 2, kind: input, shape index: {}]   ;;  %s1746_s3 = inlined_call_operand.vmem [shape: f32[32,1], index: 3, kind: input, shape index: {}]   ;;  %s1747_s4 = inlined_call_operand.vmem [shape: f32[8,8], index: 4, kind: output, shape index: {}]  }
   0x1   :  { %v29_v0 = vld [vmem:[%s1743_s0] sm:$0xff]  ;;  %v30_v1 = vld [vmem:[%s1743_s0 + $0x8] sm:$0xff]  ;;  %1305 = vset.pattern.permute.xlu0 %v1375_v3  ;;  %1306 = vset.pattern.permute.xlu1 %v1375_v3  ;;  %v31_v6 = vld [vmem:[%s1743_s0 + $0x10] sm:$0xff] }
   0x2   :  { %v1008_v2 = vld [vmem:[%s1743_s0 + $0x20] sm:$0xff]  ;;  %v1240_v4 = vpack.c.bf16 %v30_v1, %v29_v0  ;;  %v1009_v5 = vld [vmem:[%s1743_s0 + $0x28] sm:$0xff]  ;;  %v32_v7 = vld [vmem:[%s1743_s0 + $0x18] sm:$0xff] }
   0x3   :  { %v1248_v8 = vpack.c.bf16 %v1009_v5, %v1008_v2  ;;  %v1244_v9 = vpack.c.bf16 %v32_v7, %v31_v6  ;;  %v1010_v10 = vld [vmem:[%s1743_s0 + $0x30] sm:$0xff]  ;;  %v1011_v11 = vld [vmem:[%s1743_s0 + $0x38] sm:$0xff]  ;;  %v1428_v12 = vld [vmem:[%s1744_s1] sm:$0xff] }
   0x4   :  { %1241 = vmatprep.subr.bf16.mxu0 %v1240_v4  ;;  %v1252_v13 = vpack.c.bf16 %v1011_v11, %v1010_v10  ;;  %1136 = vmatprep.mubr.msk.f32.mxu0 %vm53_vm0, %v1428_v12  ;;  %v1016_v14 = vld [vmem:[%s1743_s0 + $0x40] sm:$0xff]  ;;  %v1017_v15 = vld [vmem:[%s1743_s0 + $0x48] sm:$0xff]  ;;  %v1018_v20 = vld [vmem:[%s1743_s0 + $0x50] sm:$0xff] }
   0x5   :  { %1249 = vmatprep.subr.bf16.mxu1 %v1248_v8  ;;  %1243 = vmatpush3.bf16.msra.mxu0 %v1240_v4  ;;  %v1024_v16 = vld [vmem:[%s1743_s0 + $0x60] sm:$0xff]  ;;  %v1025_v17 = vld [vmem:[%s1743_s0 + $0x68] sm:$0xff]  ;;  %v1256_v18 = vpack.c.bf16 %v1017_v15, %v1016_v14  ;;  %v1019_v21 = vld [vmem:[%s1743_s0 + $0x58] sm:$0xff] }
   0x6   :  { %1251 = vmatpush3.bf16.msra.mxu1 %v1248_v8  ;;  %1245 = vmatprep.subr.bf16.mxu0 %v1244_v9  ;;  %v1264_v19 = vpack.c.bf16 %v1025_v17, %v1024_v16  ;;  %v1455_v22 = vld [vmem:[%s1744_s1 + $0x8] sm:$0xff]  ;;  %v1026_v23 = vld [vmem:[%s1743_s0 + $0x70] sm:$0xff]  ;;  %v1027_v24 = vld [vmem:[%s1743_s0 + $0x78] sm:$0xff]  ;;  %v1260_v26 = vpack.c.bf16 %v1019_v21, %v1018_v20 }
   0x7   :  { %1253 = vmatprep.subr.bf16.mxu1 %v1252_v13  ;;  %1150 = vmatprep.mubr.msk.f32.mxu1 %vm53_vm0, %v1428_v12  ;;  %v1466_v25 = vld [vmem:[%s1744_s1 + $0x10] sm:$0xff]  ;;  %v1268_v27 = vpack.c.bf16 %v1027_v24, %v1026_v23  ;;  %v1032_v28 = vld [vmem:[%s1743_s0 + $0x80] sm:$0xff]  ;;  %v1033_v29 = vld [vmem:[%s1743_s0 + $0x88] sm:$0xff] }
   0x8   :  { %v1481_v30 = vld [vmem:[%s1744_s1 + $0x18] sm:$0xff]  ;;  %v1040_v31 = vld [vmem:[%s1743_s0 + $0xa0] sm:$0xff]  ;;  %v1041_v32 = vld [vmem:[%s1743_s0 + $0xa8] sm:$0xff]  ;;  %v1272_v33 = vpack.c.bf16 %v1033_v29, %v1032_v28 }
   0x9   :  { %1247 = vmatpush3.bf16.msra.mxu0 %v1244_v9  ;;  %v1280_v34 = vpack.c.bf16 %v1041_v32, %v1040_v31  ;;  %v1034_v35 = vld [vmem:[%s1743_s0 + $0x90] sm:$0xff]  ;;  %v1035_v36 = vld [vmem:[%s1743_s0 + $0x98] sm:$0xff]  ;;  %v1048_v41 = vld [vmem:[%s1743_s0 + $0xc0] sm:$0xff] }
   0xa   :  { %1255 = vmatpush3.bf16.msra.mxu1 %v1252_v13  ;;  %1257 = vmatprep.subr.bf16.mxu0 %v1256_v18  ;;  %v1042_v37 = vld [vmem:[%s1743_s0 + $0xb0] sm:$0xff]  ;;  %v1043_v38 = vld [vmem:[%s1743_s0 + $0xb8] sm:$0xff]  ;;  %v1276_v39 = vpack.c.bf16 %v1035_v36, %v1034_v35  ;;  %v1049_v42 = vld [vmem:[%s1743_s0 + $0xc8] sm:$0xff] }
   0xb   :  { %1265 = vmatprep.subr.bf16.mxu1 %v1264_v19  ;;  %v1284_v40 = vpack.c.bf16 %v1043_v38, %v1042_v37  ;;  %v1056_v43 = vld [vmem:[%s1743_s0 + $0xe0] sm:$0xff]  ;;  %v1057_v44 = vld [vmem:[%s1743_s0 + $0xe8] sm:$0xff]  ;;  %v1288_v45 = vpack.c.bf16 %v1049_v42, %v1048_v41  ;;  %v1050_v47 = vld [vmem:[%s1743_s0 + $0xd0] sm:$0xff] }
   0xc   :  { %1137 = vmatmul.mubr.msk.f32.vlgmr.msra.gmra.mrb[0].mxu0 %vm53_vm0, %v1455_v22  ;;  %v1296_v46 = vpack.c.bf16 %v1057_v44, %v1056_v43  ;;  %v1051_v48 = vld [vmem:[%s1743_s0 + $0xd8] sm:$0xff]  ;;  %v1058_v49 = vld [vmem:[%s1743_s0 + $0xf0] sm:$0xff]  ;;  %v21_v53 = vld [vmem:[%s1745_s2] sm:$0xff] }
   0xd   :  { %1151 = vmatmul.mubr.msk.f32.vlgmr.msra.gmra.mrb[0].mxu1 %vm53_vm0, %v1455_v22  ;;  %1259 = vmatpush3.bf16.msra.mxu0 %v1256_v18  ;;  %v1059_v50 = vld [vmem:[%s1743_s0 + $0xf8] sm:$0xff]  ;;  %v1292_v51 = vpack.c.bf16 %v1051_v48, %v1050_v47  ;;  %v23_v54 = vld [vmem:[%s1745_s2 + $0x10] sm:$0xff]  ;;  %v22_v55 = vld [vmem:[%s1745_s2 + $0x8] sm:$0xff] }
   0xe   :  { %1267 = vmatpush3.bf16.msra.mxu1 %v1264_v19  ;;  %1139 = vmatprep.mubr.msk.f32.mxu0 %vm53_vm0, %v1466_v25  ;;  %v1300_v52 = vpack.c.bf16 %v1059_v50, %v1058_v49  ;;  %v24_v56 = vld [vmem:[%s1745_s2 + $0x18] sm:$0xff]  ;;  %v25_v57 = vld [vmem:[%s1746_s3] sm:$0xff]  ;;  %v26_v58 = vld [vmem:[%s1746_s3 + $0x8] sm:$0xff] }
   0xf   :  { %1153 = vmatprep.mubr.msk.f32.mxu1 %vm53_vm0, %v1466_v25  ;;  %1261 = vmatprep.subr.bf16.mxu0 %v1260_v26  ;;  %v27_v59 = vld [vmem:[%s1746_s3 + $0x10] sm:$0xff]  ;;  %v28_v60 = vld [vmem:[%s1746_s3 + $0x18] sm:$0xff] }
  0x10   :  { %1140 = vmatmul.mubr.msk.f32.gmra.mrb[2].mxu0 %vm53_vm0, %v1481_v30  ;;  %1269 = vmatprep.subr.bf16.mxu1 %v1268_v27 }
  0x11   :  { %1154 = vmatmul.mubr.msk.f32.gmra.mrb[2].mxu1 %vm53_vm0, %v1481_v30  ;;  %1263 = vmatpush3.bf16.msra.mxu0 %v1260_v26 }
  0x12   :  { %1271 = vmatpush3.bf16.msra.mxu1 %v1268_v27  ;;  %1164 = vmatprep.mubr.msk.f32.mxu0 %vm53_vm0, %v1428_v12 }
  0x13   :  { %1178 = vmatprep.mubr.msk.f32.mxu1 %vm53_vm0, %v1428_v12  ;;  %1273 = vmatprep.subr.bf16.mxu0 %v1272_v33 }
  0x14   :  { %1165 = vmatmul.mubr.msk.f32.vlgmr.msra.gmra.mrb[4].mxu0 %vm53_vm0, %v1455_v22  ;;  %1281 = vmatprep.subr.bf16.mxu1 %v1280_v34 }
  0x15   :  { %1179 = vmatmul.mubr.msk.f32.vlgmr.msra.gmra.mrb[4].mxu1 %vm53_vm0, %v1455_v22  ;;  %1275 = vmatpush3.bf16.msra.mxu0 %v1272_v33 }
  0x16   :  { %1283 = vmatpush3.bf16.msra.mxu1 %v1280_v34  ;;  %1167 = vmatprep.mubr.msk.f32.mxu0 %vm53_vm0, %v1466_v25 }
  0x17   :  { %1181 = vmatprep.mubr.msk.f32.mxu1 %vm53_vm0, %v1466_v25  ;;  %1277 = vmatprep.subr.bf16.mxu0 %v1276_v39 }
  0x18   :  { %1168 = vmatmul.mubr.msk.f32.gmra.mrb[6].mxu0 %vm53_vm0, %v1481_v30  ;;  %1285 = vmatprep.subr.bf16.mxu1 %v1284_v40 }
  0x19   :  { %1182 = vmatmul.mubr.msk.f32.gmra.mrb[6].mxu1 %vm53_vm0, %v1481_v30  ;;  %1279 = vmatpush3.bf16.msra.mxu0 %v1276_v39 }
  0x1a   :  { %1287 = vmatpush3.bf16.msra.mxu1 %v1284_v40  ;;  %1192 = vmatprep.mubr.msk.f32.mxu0 %vm53_vm0, %v1428_v12 }
  0x1b   :  { %1206 = vmatprep.mubr.msk.f32.mxu1 %vm53_vm0, %v1428_v12  ;;  %1289 = vmatprep.subr.bf16.mxu0 %v1288_v45 }
  0x1c   :  { %1193 = vmatmul.mubr.msk.f32.vlgmr.msra.gmra.mrb[8].mxu0 %vm53_vm0, %v1455_v22  ;;  %1297 = vmatprep.subr.bf16.mxu1 %v1296_v46 }
  0x1d   :  { %1207 = vmatmul.mubr.msk.f32.vlgmr.msra.gmra.mrb[8].mxu1 %vm53_vm0, %v1455_v22  ;;  %1291 = vmatpush3.bf16.msra.mxu0 %v1288_v45 }
  0x1e   :  { %1299 = vmatpush3.bf16.msra.mxu1 %v1296_v46  ;;  %1195 = vmatprep.mubr.msk.f32.mxu0 %vm53_vm0, %v1466_v25 }
  0x1f   :  { %1209 = vmatprep.mubr.msk.f32.mxu1 %vm53_vm0, %v1466_v25  ;;  %1293 = vmatprep.subr.bf16.mxu0 %v1292_v51 }
  0x20   :  { %1196 = vmatmul.mubr.msk.f32.gmra.mrb[10].mxu0 %vm53_vm0, %v1481_v30  ;;  %1301 = vmatprep.subr.bf16.mxu1 %v1300_v52 }
  0x21   :  { %1210 = vmatmul.mubr.msk.f32.gmra.mrb[10].mxu1 %vm53_vm0, %v1481_v30  ;;  %1295 = vmatpush3.bf16.msra.mxu0 %v1292_v51 }
  0x22   :  { %1303 = vmatpush3.bf16.msra.mxu1 %v1300_v52  ;;  %1220 = vmatprep.mubr.msk.f32.mxu0 %vm53_vm0, %v1428_v12 }
  0x23   :  { %1234 = vmatprep.mubr.msk.f32.mxu1 %vm53_vm0, %v1428_v12  ;;  %35 = vperm.xlu0 %1305, %v21_v53  }
  0x24   :  { %1221 = vmatmul.mubr.msk.f32.vlgmr.msra.gmra.mrb[12].mxu0 %vm53_vm0, %v1455_v22  ;;  %45 = vperm.xlu1 %1306, %v23_v54  }
  0x25   :  { %1235 = vmatmul.mubr.msk.f32.vlgmr.msra.gmra.mrb[12].mxu1 %vm53_vm0, %v1455_v22  ;;  %1223 = vmatprep.mubr.msk.f32.mxu0 %vm53_vm0, %v1466_v25 }
  0x26   :  { %1237 = vmatprep.mubr.msk.f32.mxu1 %vm53_vm0, %v1466_v25 }
  0x27   :  { %40 = vperm.xlu0 %1305, %v22_v55  }
  0x28   :  { %1224 = vmatmul.mubr.msk.f32.gmra.mrb[14].mxu0 %vm53_vm0, %v1481_v30  ;;  %50 = vperm.xlu1 %1306, %v24_v56  }
  0x29   :  { %1238 = vmatmul.mubr.msk.f32.gmra.mrb[14].mxu1 %vm53_vm0, %v1481_v30 }
  0x2b   :  { %157 = vperm.xlu0 %1305, %v25_v57  }
  0x2c   :  { %162 = vperm.xlu1 %1306, %v26_v58  }
  0x2f   :  { %167 = vperm.xlu0 %1305, %v27_v59  }
  0x30   :  { %172 = vperm.xlu1 %1306, %v28_v60  }
  0xa2   :  { %v1605_v61 = vpop.permute.xlu0 %35 }
  0xa3   :  { %v1607_v62 = vpop.permute.xlu1 %45 }
  0xa6   :  { %v1609_v63 = vpop.permute.xlu0 %40 }
  0xa7   :  { %v1614_v7 = vpop.permute.xlu1 %50 }
  0xaa   :  { %v1626_v25 = vpop.permute.xlu0 %157 }
  0xab   :  { %v1621_v18 = vpop.permute.xlu1 %162 }
  0xae   :  { %v1638_v44 = vpop.permute.xlu0 %167 }
  0xaf   :  { %v1635_v40 = vpop.permute.xlu1 %172 }
  0xdf   :  { %v1138_v0 = vpop.f32.mrb[0].mxu0 }
  0xe0   :  { %v1152_v1 = vpop.f32.mrb[0].mxu1  ;;  %v138_v2 = vadd.f32 %v1138_v0, %v1609_v63  ;;  %v132_v3 = vpop.f32.mrb[1].mxu0 }
  0xe1   :  { %v272_v4 = vadd.f32 %v1152_v1, %v1609_v63  ;;  %v133_v5 = vadd.f32 %v132_v3, %v1605_v61  ;;  %v266_v6 = vpop.f32.mrb[1].mxu1 }
  0xe2   :  { %1307 = vtanh.f32 %v138_v2  ;;  %v267_v8 = vadd.f32 %v266_v6, %v1605_v61 }
  0xe3   :  { %1309 = vtanh.f32 %v272_v4  ;;  %v1141_v9 = vpop.f32.mrb[2].mxu0 }
  0xe4   :  { %1311 = vtanh.f32 %v133_v5  ;;  %v1155_v10 = vpop.f32.mrb[2].mxu1  ;;  %v148_v11 = vadd.f32 %v1141_v9, %v1614_v7  ;;  %v142_v12 = vpop.f32.mrb[3].mxu0 }
  0xe5   :  { %1313 = vtanh.f32 %v267_v8  ;;  %v282_v13 = vadd.f32 %v1155_v10, %v1614_v7  ;;  %v143_v14 = vadd.f32 %v142_v12, %v1607_v62  ;;  %v276_v15 = vpop.f32.mrb[3].mxu1 }
  0xe6   :  { %1315 = vtanh.f32 %v148_v11  ;;  %v277_v16 = vadd.f32 %v276_v15, %v1607_v62 }
  0xe7   :  { %1317 = vtanh.f32 %v282_v13  ;;  %v1166_v17 = vpop.f32.mrb[4].mxu0 }
  0xe8   :  { %1319 = vtanh.f32 %v143_v14  ;;  %v384_v19 = vadd.f32 %v1166_v17, %v1609_v63  ;;  %v1180_v20 = vpop.f32.mrb[4].mxu1  ;;  %v378_v21 = vpop.f32.mrb[5].mxu0 }
  0xe9   :  { %1321 = vtanh.f32 %v277_v16  ;;  %v496_v22 = vadd.f32 %v1180_v20, %v1609_v63  ;;  %v379_v23 = vadd.f32 %v378_v21, %v1605_v61  ;;  %v490_v24 = vpop.f32.mrb[5].mxu1 }
  0xea   :  { %1323 = vtanh.f32 %v384_v19  ;;  %v491_v26 = vadd.f32 %v490_v24, %v1605_v61 }
  0xeb   :  { %1325 = vtanh.f32 %v496_v22  ;;  %v1169_v27 = vpop.f32.mrb[6].mxu0 }
  0xec   :  { %v1308_v28 = vpop.eup %1307  ;;  %1327 = vtanh.f32 %v379_v23  ;;  %v394_v29 = vadd.f32 %v1169_v27, %v1614_v7  ;;  %v1183_v30 = vpop.f32.mrb[6].mxu1 }
  0xed   :  { %v388_v31 = vpop.f32.mrb[7].mxu0  ;;  %v1310_v32 = vpop.eup %1309  ;;  %1329 = vtanh.f32 %v491_v26  ;;  %v506_v33 = vadd.f32 %v1183_v30, %v1614_v7  ;;  %v176_v36 = vmul.f32 %v1308_v28, %v1621_v18 }
  0xee   :  { %v389_v34 = vadd.f32 %v388_v31, %v1607_v62  ;;  %v500_v35 = vpop.f32.mrb[7].mxu1  ;;  %v1312_v37 = vpop.eup %1311  ;;  %1331 = vtanh.f32 %v394_v29  ;;  %v290_v39 = vmul.f32 %v1310_v32, %v1621_v18 }
  0xef   :  { %v501_v38 = vadd.f32 %v500_v35, %v1607_v62  ;;  %v1314_v41 = vpop.eup %1313  ;;  %1333 = vtanh.f32 %v506_v33  ;;  %v175_v42 = vmul.f32 %v1312_v37, %v1626_v25  ;;  %v1194_v43 = vpop.f32.mrb[8].mxu0  ;;  %v181_v45 = vsel %vm179_vm1, %v176_v36, 0.0 }
  0xf0   :  { %v1316_v46 = vpop.eup %1315  ;;  %1335 = vtanh.f32 %v389_v34  ;;  %v289_v47 = vmul.f32 %v1314_v41, %v1626_v25  ;;  %v608_v48 = vadd.f32 %v1194_v43, %v1609_v63  ;;  %v1208_v49 = vpop.f32.mrb[8].mxu1  ;;  %v294_v51 = vsel %vm179_vm1, %v290_v39, 0.0 }
  0xf1   :  { %v602_v50 = vpop.f32.mrb[9].mxu0  ;;  %v1318_v52 = vpop.eup %1317  ;;  %1337 = vtanh.f32 %v501_v38  ;;  %v720_v53 = vadd.f32 %v1208_v49, %v1609_v63  ;;  %v178_v56 = vmul.f32 %v1316_v46, %v1635_v40  ;;  %v180_v60 = vsel %vm179_vm1, %v175_v42, 0.0 }
  0xf2   :  { %v603_v54 = vadd.f32 %v602_v50, %v1605_v61  ;;  %v714_v55 = vpop.f32.mrb[9].mxu1  ;;  %v1320_v57 = vpop.eup %1319  ;;  %1339 = vtanh.f32 %v608_v48  ;;  %v292_v59 = vmul.f32 %v1318_v52, %v1635_v40  ;;  %v182_v3 = vadd.f32 %v181_v45, %v180_v60 }
  0xf3   :  { %v715_v58 = vadd.f32 %v714_v55, %v1605_v61  ;;  %v1322_v0 = vpop.eup %1321  ;;  %1341 = vtanh.f32 %v720_v53  ;;  %v185_v1 = vsel %vm179_vm1, %v178_v56, 0.0  ;;  %v177_v2 = vmul.f32 %v1320_v57, %v1638_v44  ;;  %v1197_v4 = vpop.f32.mrb[10].mxu0 }
  0xf4   :  { %v1324_v5 = vpop.eup %1323  ;;  %1343 = vtanh.f32 %v603_v54  ;;  %v298_v6 = vsel %vm179_vm1, %v292_v59, 0.0  ;;  %v291_v8 = vmul.f32 %v1322_v0, %v1638_v44  ;;  %v293_v9 = vsel %vm179_vm1, %v289_v47, 0.0  ;;  %v1211_v10 = vpop.f32.mrb[10].mxu1 }
  0xf5   :  { %v612_v11 = vpop.f32.mrb[11].mxu0  ;;  %v1326_v12 = vpop.eup %1325  ;;  %v402_v13 = vmul.f32 %v1324_v5, %v1621_v18  ;;  %1345 = vtanh.f32 %v715_v58  ;;  %v183_v14 = vsel %vm179_vm1, %v177_v2, 0.0  ;;  %v295_v15 = vadd.f32 %v294_v51, %v293_v9 }
  0xf6   :  { %v724_v16 = vpop.f32.mrb[11].mxu1  ;;  %v1328_v17 = vpop.eup %1327  ;;  %v514_v19 = vmul.f32 %v1326_v12, %v1621_v18  ;;  %v184_v20 = vadd.f32 %v183_v14, %v182_v3  ;;  %v296_v21 = vsel %vm179_vm1, %v291_v8, 0.0  ;;  %v618_v22 = vadd.f32 %v1197_v4, %v1614_v7 }
  0xf7   :  { %v1330_v23 = vpop.eup %1329  ;;  %v401_v24 = vmul.f32 %v1328_v17, %v1626_v25  ;;  %v297_v26 = vadd.f32 %v296_v21, %v295_v15  ;;  %v406_v27 = vsel %vm179_vm1, %v402_v13, 0.0  ;;  %v730_v28 = vadd.f32 %v1211_v10, %v1614_v7  ;;  %v1663_v29 = vpop.f32.mrb[12].mxu0 }
  0xf8   :  { %v1332_v30 = vpop.eup %1331  ;;  %v513_v31 = vmul.f32 %v1330_v23, %v1626_v25  ;;  %v186_v32 = vadd.f32 %v185_v1, %v184_v20  ;;  %v518_v33 = vsel %vm179_vm1, %v514_v19, 0.0  ;;  %1347 = vtanh.f32 %v618_v22  ;;  %v1667_v34 = vpop.f32.mrb[12].mxu1 }
  0xf9   :  { %v1669_v35 = vpop.f32.mrb[13].mxu0  ;;  %v1334_v36 = vpop.eup %1333  ;;  %v404_v37 = vmul.f32 %v1332_v30, %v1635_v40  ;;  %v299_v38 = vadd.f32 %v298_v6, %v297_v26  ;;  %v405_v39 = vsel %vm179_vm1, %v401_v24, 0.0  ;;  %1349 = vtanh.f32 %v730_v28 }
  0xfa   :  { %v1673_v41 = vpop.f32.mrb[13].mxu1  ;;  %v1336_v42 = vpop.eup %1335  ;;  %v516_v43 = vmul.f32 %v1334_v36, %v1635_v40  ;;  %v187_v45 = vrot.slane %v186_v32, 4  ;;  %v407_v46 = vadd.f32 %v406_v27, %v405_v39  ;;  %v517_v47 = vsel %vm179_vm1, %v513_v31, 0.0 }
  0xfb   :  { %v1338_v48 = vpop.eup %1337  ;;  %v410_v49 = vsel %vm179_vm1, %v404_v37, 0.0  ;;  %v300_v50 = vrot.slane %v299_v38, 4  ;;  %v403_v51 = vmul.f32 %v1336_v42, %v1638_v44  ;;  %v519_v52 = vadd.f32 %v518_v33, %v517_v47  ;;  %v1225_v53 = vpop.f32.mrb[14].mxu0 }
  0xfc   :  { %v1340_v54 = vpop.eup %1339  ;;  %v522_v55 = vsel %vm179_vm1, %v516_v43, 0.0  ;;  %v188_v56 = vadd.f32 %v187_v45, %v186_v32  ;;  %v515_v57 = vmul.f32 %v1338_v48, %v1638_v44  ;;  %v613_v58 = vadd.f32 %v612_v11, %v1607_v62  ;;  %v1239_v59 = vpop.f32.mrb[14].mxu1 }
  0xfd   :  { %v836_v60 = vpop.f32.mrb[15].mxu0  ;;  %v1342_v0 = vpop.eup %1341  ;;  %v626_v1 = vmul.f32 %v1340_v54, %v1621_v18  ;;  %v301_v2 = vadd.f32 %v300_v50, %v299_v38  ;;  %v408_v3 = vsel %vm179_vm1, %v403_v51, 0.0  ;;  %v725_v4 = vadd.f32 %v724_v16, %v1607_v62 }
  0xfe   :  { %v948_v5 = vpop.f32.mrb[15].mxu1  ;;  %v1344_v6 = vpop.eup %1343  ;;  %v738_v8 = vmul.f32 %v1342_v0, %v1621_v18  ;;  %v189_v9 = vrot.slane %v188_v56, 2  ;;  %v409_v10 = vadd.f32 %v408_v3, %v407_v46  ;;  %v520_v12 = vsel %vm179_vm1, %v515_v57, 0.0 }
  0xff   :  { %v1346_v13 = vpop.eup %1345  ;;  %v630_v11 = vsel %vm179_vm1, %v626_v1, 0.0  ;;  %v625_v14 = vmul.f32 %v1344_v6, %v1626_v25  ;;  %v302_v15 = vrot.slane %v301_v2, 2  ;;  %v521_v17 = vadd.f32 %v520_v12, %v519_v52 }
 0x100   :  { %v742_v19 = vsel %vm179_vm1, %v738_v8, 0.0  ;;  %v737_v20 = vmul.f32 %v1346_v13, %v1626_v25  ;;  %v190_v16 = vadd.f32 %v189_v9, %v188_v56  ;;  %v411_v21 = vadd.f32 %v410_v49, %v409_v10 }
 0x101   :  { %v629_v22 = vsel %vm179_vm1, %v625_v14, 0.0  ;;  %v303_v23 = vadd.f32 %v302_v15, %v301_v2  ;;  %v523_v24 = vadd.f32 %v522_v55, %v521_v17  ;;  %1351 = vtanh.f32 %v613_v58 }
 0x102   :  { %v1348_v26 = vpop.eup %1347  ;;  %v631_v27 = vadd.f32 %v630_v11, %v629_v22  ;;  %v741_v28 = vsel %vm179_vm1, %v737_v20, 0.0  ;;  %v191_v30 = vrot.slane %v190_v16, 1  ;;  %v412_v31 = vrot.slane %v411_v21, 4 }
 0x103   :  { %v1350_v32 = vpop.eup %1349  ;;  %v743_v33 = vadd.f32 %v742_v19, %v741_v28  ;;  %v304_v36 = vrot.slane %v303_v23, 1  ;;  %v524_v37 = vrot.slane %v523_v24, 4  ;;  %1353 = vtanh.f32 %v725_v4 }
 0x104   :  { %v192_v38 = vadd.f32 %v191_v30, %v190_v16  ;;  %v413_v39 = vadd.f32 %v412_v31, %v411_v21  ;;  %v832_v45 = vadd.f32 %v1663_v29, %v1609_v63  ;;  %v944_v47 = vadd.f32 %v1667_v34, %v1609_v63 }
 0x105   :  { %v305_v42 = vadd.f32 %v304_v36, %v303_v23  ;;  %v525_v43 = vadd.f32 %v524_v37, %v523_v24  ;;  %v827_v48 = vadd.f32 %v1669_v35, %v1605_v61  ;;  %v939_v50 = vadd.f32 %v1673_v41, %v1605_v61 }
 0x106   :  { %194 = vst.msk [vmem:[#allocation2] sm:$0x1] %vm193_vm2, %v192_v38  ;;  %v414_v46 = vrot.slane %v413_v39, 2  ;;  %1355 = vtanh.f32 %v832_v45  ;;  %v842_v51 = vadd.f32 %v1225_v53, %v1614_v7  ;;  %v954_v29 = vadd.f32 %v1239_v59, %v1614_v7 }
 0x107   :  { %306 = vst.msk [vmem:[#allocation2 + $0x1] sm:$0x1] %vm193_vm2, %v305_v42  ;;  %v526_v49 = vrot.slane %v525_v43, 2  ;;  %1357 = vtanh.f32 %v944_v47  ;;  %v837_v63 = vadd.f32 %v836_v60, %v1607_v62  ;;  %v949_v35 = vadd.f32 %v948_v5, %v1607_v62 }
 0x108   :  { %v415_v52 = vadd.f32 %v414_v46, %v413_v39  ;;  %1359 = vtanh.f32 %v827_v48  ;;  %v628_v61 = vmul.f32 %v1348_v26, %v1635_v40  ;;  %v740_v62 = vmul.f32 %v1350_v32, %v1635_v40 }
 0x109   :  { %v527_v54 = vadd.f32 %v526_v49, %v525_v43  ;;  %1361 = vtanh.f32 %v939_v50 }
 0x10a   :  { %v416_v34 = vrot.slane %v415_v52, 1  ;;  %1363 = vtanh.f32 %v842_v51  ;;  %v634_v0 = vsel %vm179_vm1, %v628_v61, 0.0  ;;  %v746_v9 = vsel %vm179_vm1, %v740_v62, 0.0 }
 0x10b   :  { %v1352_v55 = vpop.eup %1351  ;;  %v528_v56 = vrot.slane %v527_v54, 1  ;;  %1365 = vtanh.f32 %v954_v29 }
 0x10c   :  { %v417_v57 = vadd.f32 %v416_v34, %v415_v52  ;;  %v627_v41 = vmul.f32 %v1352_v55, %v1638_v44  ;;  %1367 = vtanh.f32 %v837_v63 }
 0x10d   :  { %v529_v53 = vadd.f32 %v528_v56, %v527_v54  ;;  %v1354_v7 = vpop.eup %1353  ;;  %1369 = vtanh.f32 %v949_v35 }
 0x10e   :  { %418 = vst.msk [vmem:[#allocation2 + $0x2] sm:$0x1] %vm193_vm2, %v417_v57  ;;  %v632_v58 = vsel %vm179_vm1, %v627_v41, 0.0  ;;  %v739_v60 = vmul.f32 %v1354_v7, %v1638_v44 }
 0x10f   :  { %530 = vst.msk [vmem:[#allocation2 + $0x3] sm:$0x1] %vm193_vm2, %v529_v53  ;;  %v633_v59 = vadd.f32 %v632_v58, %v631_v27 }
 0x110   :  { %v1356_v1 = vpop.eup %1355  ;;  %v744_v3 = vsel %vm179_vm1, %v739_v60, 0.0 }
 0x111   :  { %v635_v2 = vadd.f32 %v634_v0, %v633_v59  ;;  %v1358_v4 = vpop.eup %1357  ;;  %v745_v5 = vadd.f32 %v744_v3, %v743_v33  ;;  %v850_v6 = vmul.f32 %v1356_v1, %v1621_v18 }
 0x112   :  { %v1360_v8 = vpop.eup %1359  ;;  %v962_v12 = vmul.f32 %v1358_v4, %v1621_v18 }
 0x113   :  { %v636_v10 = vrot.slane %v635_v2, 4  ;;  %v1362_v13 = vpop.eup %1361  ;;  %v747_v11 = vadd.f32 %v746_v9, %v745_v5  ;;  %v854_v14 = vsel %vm179_vm1, %v850_v6, 0.0  ;;  %v849_v15 = vmul.f32 %v1360_v8, %v1626_v25 }
 0x114   :  { %v1364_v17 = vpop.eup %1363  ;;  %v966_v20 = vsel %vm179_vm1, %v962_v12, 0.0  ;;  %v961_v16 = vmul.f32 %v1362_v13, %v1626_v25 }
 0x115   :  { %v637_v19 = vadd.f32 %v636_v10, %v635_v2  ;;  %v1366_v21 = vpop.eup %1365  ;;  %v748_v22 = vrot.slane %v747_v11, 4  ;;  %v853_v23 = vsel %vm179_vm1, %v849_v15, 0.0  ;;  %v852_v32 = vmul.f32 %v1364_v17, %v1635_v40 }
 0x116   :  { %v1368_v24 = vpop.eup %1367  ;;  %v855_v27 = vadd.f32 %v854_v14, %v853_v23  ;;  %v965_v18 = vsel %vm179_vm1, %v961_v16, 0.0  ;;  %v964_v37 = vmul.f32 %v1366_v21, %v1635_v40 }
 0x117   :  { %v638_v26 = vrot.slane %v637_v19, 2  ;;  %v1370_v28 = vpop.eup %1369  ;;  %v749_v30 = vadd.f32 %v748_v22, %v747_v11  ;;  %v967_v31 = vadd.f32 %v966_v20, %v965_v18  ;;  %v851_v33 = vmul.f32 %v1368_v24, %v1638_v44 }
 0x118   :  { %v963_v25 = vmul.f32 %v1370_v28, %v1638_v44  ;;  %v858_v47 = vsel %vm179_vm1, %v852_v32, 0.0  ;;  %v970_v50 = vsel %vm179_vm1, %v964_v37, 0.0 }
 0x119   :  { %v639_v36 = vadd.f32 %v638_v26, %v637_v19  ;;  %v750_v38 = vrot.slane %v749_v30, 2  ;;  %v856_v39 = vsel %vm179_vm1, %v851_v33, 0.0 }
 0x11a   :  { %v857_v43 = vadd.f32 %v856_v39, %v855_v27  ;;  %v968_v45 = vsel %vm179_vm1, %v963_v25, 0.0 }
 0x11b   :  { %v640_v42 = vrot.slane %v639_v36, 1  ;;  %v751_v46 = vadd.f32 %v750_v38, %v749_v30  ;;  %v969_v48 = vadd.f32 %v968_v45, %v967_v31 }
 0x11c   :  { %v859_v51 = vadd.f32 %v858_v47, %v857_v43 }
 0x11d   :  { %v641_v49 = vadd.f32 %v640_v42, %v639_v36  ;;  %v752_v52 = vrot.slane %v751_v46, 1  ;;  %v971_v29 = vadd.f32 %v970_v50, %v969_v48 }
 0x11e   :  { %v860_v40 = vrot.slane %v859_v51, 4 }
 0x11f   :  { %642 = vst.msk [vmem:[#allocation2 + $0x4] sm:$0x1] %vm193_vm2, %v641_v49  ;;  %v753_v44 = vadd.f32 %v752_v52, %v751_v46  ;;  %v972_v54 = vrot.slane %v971_v29, 4 }
 0x120   :  { %v861_v63 = vadd.f32 %v860_v40, %v859_v51 }
 0x121   :  { %754 = vst.msk [vmem:[#allocation2 + $0x5] sm:$0x1] %vm193_vm2, %v753_v44  ;;  %v973_v34 = vadd.f32 %v972_v54, %v971_v29 }
 0x122   :  { %v862_v35 = vrot.slane %v861_v63, 2 }
 0x123   :  { %v974_v55 = vrot.slane %v973_v34, 2 }
 0x124   :  { %v863_v56 = vadd.f32 %v862_v35, %v861_v63 }
 0x125   :  { %v975_v57 = vadd.f32 %v974_v55, %v973_v34 }
 0x126   :  { %v864_v61 = vrot.slane %v863_v56, 1 }
 0x127   :  { %v976_v41 = vrot.slane %v975_v57, 1 }
 0x128   :  { %v865_v53 = vadd.f32 %v864_v61, %v863_v56 }
 0x129   :  { %v977_v7 = vadd.f32 %v976_v41, %v975_v57 }
 0x12a   :  { %866 = vst.msk [vmem:[#allocation2 + $0x6] sm:$0x1] %vm193_vm2, %v865_v53 }
 0x12b   :  { %978 = vst.msk [vmem:[#allocation2 + $0x7] sm:$0x1] %vm193_vm2, %v977_v7 }
 0x132   :  { %v979_v58 = vld [vmem:[#allocation2] sm:$0xff] }
 0x133   :  { %v980_v62 = vsel %vm179_vm1, %v979_v58, -inf }
 0x134   :  { %v981_v59 = vrot.slane %v980_v62, 4 }
 0x136   :  { %v982_v60 = vmax.f32 %v980_v62, %v981_v59 }
 0x138   :  { %v983_v0 = vrot.slane %v982_v60, 2 }
 0x13a   :  { %v984_v1 = vmax.f32 %v982_v60, %v983_v0 }
 0x13c   :  { %v985_v2 = vrot.slane %v984_v1, 1 }
 0x13e   :  { %v986_v3 = vmax.f32 %v984_v1, %v985_v2 }
 0x140   :  { %v987_v4 = vsub.f32 %v979_v58, %v986_v3 }
 0x142   :  { %v988_v5 = vmul.f32 1.442695, %v987_v4 }
 0x144   :  { %1371 = vpow2.f32 %v988_v5 }
 0x14e   :  { %v1372_v6 = vpop.eup %1371 }
 0x14f   :  { %v990_v8 = vsel %vm179_vm1, %v1372_v6, 0.0 }
 0x150   :  { %v991_v9 = vrot.slane %v990_v8, 4 }
 0x152   :  { %v992_v10 = vadd.f32 %v991_v9, %v990_v8 }
 0x154   :  { %v993_v12 = vrot.slane %v992_v10, 2 }
 0x156   :  { %v994_v13 = vadd.f32 %v993_v12, %v992_v10 }
 0x158   :  { %v995_v11 = vrot.slane %v994_v13, 1 }
 0x15a   :  { %v996_v14 = vadd.f32 %v995_v11, %v994_v13 }
 0x15c   :  { %1373 = vrcp.f32 %v996_v14 }
 0x166   :  { %v1374_v15 = vpop.eup %1373 }
 0x167   :  { %v998_v17 = vmul.f32 %v1374_v15, %v1372_v6 }
 0x169   :  { %999 = vst.msk [vmem:[%s1747_s4] sm:$0xff] %vm179_vm1, %v998_v17 }

</bundles_post_ra>
